<compile_context>
chip_gen: v5e
topology: v5e:2x2
jax: 0.10.0
libtpu: 0.0.40
codegen_flags: <defaults>
</compile_context>

<pallas_src>
import functools

import jax
import jax.numpy as jnp
from jax import lax
from jax.experimental import pallas as pl
from jax.experimental.pallas import tpu as pltpu

LANE = 128
MAX_TILE_S = 65536
TARGET_BLOCK_BYTES = 2 * 1024 * 1024  # per logits block (fits all generations)


def _round_up(a, b):
    return (a + b - 1) // b * b


def _cb_ce_stats_kernel(x_ref, t_ref, cnt_ref, nll_ref, *, spatial_size, tile_s):
    """Accumulate per-class (count, nll_sum) for one batch element.

    x_ref  : (1, C, TILE_S) logits tile (any float dtype, cast to f32 here)
    t_ref  : (1, 1, TILE_S) int32 target tile
    cnt_ref: (1, C, 1) f32 output -- bincount of targets for this batch index
    nll_ref: (1, C, 1) f32 output -- per-class sum of (lse - x_c)
    """
    s = pl.program_id(1)

    @pl.when(s == 0)
    def _():
        cnt_ref[...] = jnp.zeros_like(cnt_ref)
        nll_ref[...] = jnp.zeros_like(nll_ref)

    x = x_ref[0].astype(jnp.float32)          # (C, TILE_S)
    t = t_ref[0]                              # (1, TILE_S) int32

    # Lane-position mask for the (possibly ragged) last spatial tile; OOB
    # lanes of the block hold garbage and must never contribute.
    pos = s * tile_s + lax.broadcasted_iota(jnp.int32, t.shape, 1)
    in_bounds = pos < spatial_size                              # (1, TILE_S)

    class_ids = lax.broadcasted_iota(jnp.int32, x.shape, 0)     # (C, TILE_S)
    one_hot = jnp.logical_and(class_ids == t, in_bounds)        # (C, TILE_S)

    # Stable log-softmax pieces: nll_pixel = lse - x[t] = log_sum - e[t].
    m = jnp.max(x, axis=0, keepdims=True)                       # (1, TILE_S)
    e = x - m                                                   # (C, TILE_S)
    log_sum = jnp.log(jnp.sum(jnp.exp(e), axis=0, keepdims=True))  # (1, TILE_S)

    # Tiny per-class lane reductions accumulated in the VMEM-resident output
    # blocks (same block index across the "arbitrary" spatial grid axis).
    # jnp.where (select) keeps garbage NaN/Inf from OOB lanes out of the sums.
    cnt_ref[0] += jnp.sum(one_hot.astype(jnp.float32), axis=1, keepdims=True)
    nll_ref[0] += jnp.sum(jnp.where(one_hot, log_sum - e, 0.0),
                          axis=1, keepdims=True)


@functools.partial(jax.jit, static_argnames=("ignore_index", "reduction"))
def class_balanced_ce_loss(logits, target, ignore_index=-100, reduction="mean"):
    """JAX/Pallas equivalent of ClassBalancedCELoss.forward.

    logits: (N, C, *spatial) float tensor.
    target: (N, *spatial) integer class indices.
    """
    N, C = logits.shape[0], logits.shape[1]
    S = 1
    for d in logits.shape[2:]:
        S *= d

    x = logits.reshape(N, C, S)
    t = target.reshape(N, 1, S).astype(jnp.int32)

    # Large lane-dense tile (~TARGET_BLOCK_BYTES of logits per block).
    itemsize = jnp.dtype(logits.dtype).itemsize
    tile_s = TARGET_BLOCK_BYTES // max(C * itemsize, 1)
    tile_s = max(LANE, (tile_s // LANE) * LANE)
    tile_s = min(tile_s, MAX_TILE_S, _round_up(S, LANE))
    num_s = (S + tile_s - 1) // tile_s
    grid = (N, num_s)

    kernel = functools.partial(
        _cb_ce_stats_kernel, spatial_size=S, tile_s=tile_s)

    cnt, nll = pl.pallas_call(
        kernel,
        out_shape=(
            jax.ShapeDtypeStruct((N, C, 1), jnp.float32),
            jax.ShapeDtypeStruct((N, C, 1), jnp.float32),
        ),
        grid_spec=pltpu.PrefetchScalarGridSpec(
            num_scalar_prefetch=0,
            grid=grid,
            in_specs=[
                pl.BlockSpec((1, C, tile_s), lambda n, s: (n, 0, s)),
                pl.BlockSpec((1, 1, tile_s), lambda n, s: (n, 0, s)),
            ],
            out_specs=(
                pl.BlockSpec((1, C, 1), lambda n, s: (n, 0, 0)),
                pl.BlockSpec((1, C, 1), lambda n, s: (n, 0, 0)),
            ),
        ),
        compiler_params=pltpu.CompilerParams(
            dimension_semantics=("parallel", "arbitrary")),
    )(x, t)

    counts = jnp.sum(cnt[:, :, 0], axis=0)     # (C,) bincount over all pixels
    nll_sum = jnp.sum(nll[:, :, 0], axis=0)    # (C,) per-class NLL sums

    nonzero = counts > 0
    k = jnp.sum(nonzero.astype(jnp.float32))          # num_of_classes
    total = jnp.float32(target.size)                  # target.numel()
    # weight[c] = (numel / K) / counts[c]; zero for absent classes (they never
    # contribute anyway, and this avoids inf * 0 below).
    weights = jnp.where(nonzero, (total / k) / jnp.maximum(counts, 1.0), 0.0)

    # Pixels whose target == ignore_index are excluded from the loss but (as
    # in the PyTorch module) still participate in the bincount-based weights.
    keep = (jnp.arange(C) != ignore_index).astype(jnp.float32)
    num = jnp.sum(weights * nll_sum * keep)
    den = jnp.sum(weights * counts * keep)

    if reduction == "mean":
        return num / den
    elif reduction == "sum":
        return num
    else:
        # TODO(synk): reduction='none' needs a second per-pixel pass that
        # applies the class weights; only 'mean'/'sum' are implemented.
        raise NotImplementedError("reduction='none' is not implemented")


def _reference(logits, target, ignore_index=-100):
    """Pure-JAX reference matching F.cross_entropy(weight=class_balancing)."""
    C = logits.shape[1]
    x = jnp.moveaxis(logits.astype(jnp.float32), 1, -1).reshape(-1, C)
    t = target.reshape(-1).astype(jnp.int32)
    counts = jnp.bincount(t, length=C).astype(jnp.float32)
    k = jnp.sum(counts > 0)
    weights = jnp.where(counts > 0, (t.size / k) / jnp.maximum(counts, 1.0), 0.0)
    lse = jax.scipy.special.logsumexp(x, axis=1)
    x_t = jnp.take_along_axis(x, jnp.clip(t, 0, C - 1)[:, None], axis=1)[:, 0]
    valid = t != ignore_index
    w_i = jnp.where(valid, weights[jnp.clip(t, 0, C - 1)], 0.0)
    num = jnp.sum(w_i * (lse - x_t))
    den = jnp.sum(w_i)
    return num / den


if __name__ == "__main__":
    key = jax.random.PRNGKey(0)
    k1, k2 = jax.random.split(key, 2)

    N, C, H, W = 2, 4, 16, 16
    logits = jax.random.normal(k1, (N, C, H, W), dtype=jnp.float32) * 2.0
    target = jax.random.randint(k2, (N, H, W), 0, C, dtype=jnp.int32)

    out = class_balanced_ce_loss(logits, target,
                                 ignore_index=-100, reduction="mean")
    out = jax.block_until_ready(out)

    ref = _reference(logits, target, ignore_index=-100)
    assert jnp.allclose(out, ref, rtol=1e-5, atol=1e-5), (out, ref)

    print("KERNEL_OK")
</pallas_src>

<mosaic_0001>
module attributes {stable_mosaic.version = 11 : i64} {
  func.func @_cb_ce_stats_kernel(%arg0: i32, %arg1: i32, %arg2: memref<1x4x256xf32, #tpu.memory_space<vmem>>, %arg3: memref<1x1x256xi32, #tpu.memory_space<vmem>>, %arg4: memref<1x4x1xf32, #tpu.memory_space<vmem>>, %arg5: memref<1x4x1xf32, #tpu.memory_space<vmem>>) attributes {dimension_semantics = [#tpu.dimension_semantics<parallel>, #tpu.dimension_semantics<arbitrary>], iteration_bounds = array<i64: 2, 1>, scalar_prefetch = 0 : i64, scratch_operands = 0 : i64, tpu.core_type = #tpu.core_type<tc>, window_params = [{transform_indices = @transform_0, window_bounds = array<i64: 1, 4, 256>}, {transform_indices = @transform_1, window_bounds = array<i64: 1, 1, 256>}, {transform_indices = @transform_2, window_bounds = array<i64: 1, 4, 1>}, {transform_indices = @transform_3, window_bounds = array<i64: 1, 4, 1>}]} {
    %c0_i32 = arith.constant 0 : i32
    %0 = arith.cmpi eq, %arg1, %c0_i32 : i32
    %1 = arith.extui %0 : i1 to i32
    %c0_i32_0 = arith.constant 0 : i32
    %2 = arith.cmpi ne, %1, %c0_i32_0 : i32
    scf.if %2 {
      %cst_23 = arith.constant 0.000000e+00 : f32
      %48 = vector.broadcast %cst_23 : f32 to vector<1x4x1xf32>
      %c0_24 = arith.constant 0 : index
      %c0_25 = arith.constant 0 : index
      %c0_26 = arith.constant 0 : index
      %49 = vector.load %arg4[%c0_24, %c0_25, %c0_26] : memref<1x4x1xf32, #tpu.memory_space<vmem>>, vector<1x4x1xf32>
      tpu.vector_store %arg4[%c0_24, %c0_25, %c0_26], %48 {strides = array<i32>} : memref<1x4x1xf32, #tpu.memory_space<vmem>>, vector<1x4x1xf32>,
      %cst_27 = arith.constant 0.000000e+00 : f32
      %50 = vector.broadcast %cst_27 : f32 to vector<1x4x1xf32>
      %c0_28 = arith.constant 0 : index
      %c0_29 = arith.constant 0 : index
      %c0_30 = arith.constant 0 : index
      %51 = vector.load %arg5[%c0_28, %c0_29, %c0_30] : memref<1x4x1xf32, #tpu.memory_space<vmem>>, vector<1x4x1xf32>
      tpu.vector_store %arg5[%c0_28, %c0_29, %c0_30], %50 {strides = array<i32>} : memref<1x4x1xf32, #tpu.memory_space<vmem>>, vector<1x4x1xf32>,
    } else {
    }
    %c0 = arith.constant 0 : index
    %c0_1 = arith.constant 0 : index
    %c0_2 = arith.constant 0 : index
    %3 = vector.load %arg2[%c0, %c0_1, %c0_2] : memref<1x4x256xf32, #tpu.memory_space<vmem>>, vector<1x4x256xf32>
    %4 = vector.shape_cast %3 : vector<1x4x256xf32> to vector<4x256xf32>
    %c0_3 = arith.constant 0 : index
    %c0_4 = arith.constant 0 : index
    %c0_5 = arith.constant 0 : index
    %5 = vector.load %arg3[%c0_3, %c0_4, %c0_5] : memref<1x1x256xi32, #tpu.memory_space<vmem>>, vector<1x1x256xi32>
    %6 = vector.shape_cast %5 : vector<1x1x256xi32> to vector<1x256xi32>
    %c256_i32 = arith.constant 256 : i32
    %7 = arith.muli %arg1, %c256_i32 : i32
    %8 = tpu.iota {dimensions = array<i32: 1>} : vector<1x256xi32>
    %9 = vector.broadcast %7 : i32 to vector<1x256xi32>
    %10 = arith.addi %9, %8 : vector<1x256xi32>
    %c256_i32_6 = arith.constant 256 : i32
    %11 = vector.broadcast %c256_i32_6 : i32 to vector<1x256xi32>
    %12 = arith.cmpi slt, %10, %11 : vector<1x256xi32>
    %13 = tpu.iota {dimensions = array<i32: 0>} : vector<4x256xi32>
    %14 = vector.broadcast %6 : vector<1x256xi32> to vector<4x256xi32>
    %15 = arith.cmpi eq, %13, %14 : vector<4x256xi32>
    %16 = vector.broadcast %12 : vector<1x256xi1> to vector<4x256xi1>
    %17 = arith.andi %15, %16 : vector<4x256xi1>
    %cst = arith.constant dense<0xFF800000> : vector<256xf32>
    %18 = vector.multi_reduction <maximumf>, %4, %cst [0] : vector<4x256xf32> to vector<256xf32>
    %19 = vector.shape_cast %18 : vector<256xf32> to vector<1x256xf32>
    %20 = vector.broadcast %19 : vector<1x256xf32> to vector<4x256xf32>
    %21 = arith.subf %4, %20 : vector<4x256xf32>
    %22 = math.exp %21 : vector<4x256xf32>
    %cst_7 = arith.constant dense<0.000000e+00> : vector<256xf32>
    %23 = vector.multi_reduction <add>, %22, %cst_7 [0] : vector<4x256xf32> to vector<256xf32>
    %24 = vector.shape_cast %23 : vector<256xf32> to vector<1x256xf32>
    %25 = math.log %24 : vector<1x256xf32>
    %c0_8 = arith.constant 0 : index
    %c0_9 = arith.constant 0 : index
    %c0_10 = arith.constant 0 : index
    %26 = vector.load %arg4[%c0_8, %c0_9, %c0_10] : memref<1x4x1xf32, #tpu.memory_space<vmem>>, vector<1x4x1xf32>
    %27 = vector.shape_cast %26 : vector<1x4x1xf32> to vector<4x1xf32>
    %28 = arith.extui %17 : vector<4x256xi1> to vector<4x256xi32>
    %29 = arith.sitofp %28 : vector<4x256xi32> to vector<4x256xf32>
    %cst_11 = arith.constant dense<0.000000e+00> : vector<4xf32>
    %30 = vector.multi_reduction <add>, %29, %cst_11 [1] : vector<4x256xf32> to vector<4xf32>
    %31 = vector.shape_cast %30 : vector<4xf32> to vector<4x1xf32>
    %32 = arith.addf %27, %31 : vector<4x1xf32>
    %c0_12 = arith.constant 0 : index
    %c0_13 = arith.constant 0 : index
    %c0_14 = arith.constant 0 : index
    %33 = vector.load %arg4[%c0_12, %c0_13, %c0_14] : memref<1x4x1xf32, #tpu.memory_space<vmem>>, vector<1x4x1xf32>
    %34 = vector.shape_cast %33 : vector<1x4x1xf32> to vector<4x1xf32>
    %35 = vector.shape_cast %32 : vector<4x1xf32> to vector<1x4x1xf32>
    tpu.vector_store %arg4[%c0_12, %c0_13, %c0_14], %35 {strides = array<i32>} : memref<1x4x1xf32, #tpu.memory_space<vmem>>, vector<1x4x1xf32>,
    %c0_15 = arith.constant 0 : index
    %c0_16 = arith.constant 0 : index
    %c0_17 = arith.constant 0 : index
    %36 = vector.load %arg5[%c0_15, %c0_16, %c0_17] : memref<1x4x1xf32, #tpu.memory_space<vmem>>, vector<1x4x1xf32>
    %37 = vector.shape_cast %36 : vector<1x4x1xf32> to vector<4x1xf32>
    %38 = vector.broadcast %25 : vector<1x256xf32> to vector<4x256xf32>
    %39 = arith.subf %38, %21 : vector<4x256xf32>
    %cst_18 = arith.constant 0.000000e+00 : f32
    %40 = vector.broadcast %cst_18 : f32 to vector<4x256xf32>
    %41 = arith.select %17, %39, %40 : vector<4x256xi1>, vector<4x256xf32>
    %cst_19 = arith.constant dense<0.000000e+00> : vector<4xf32>
    %42 = vector.multi_reduction <add>, %41, %cst_19 [1] : vector<4x256xf32> to vector<4xf32>
    %43 = vector.shape_cast %42 : vector<4xf32> to vector<4x1xf32>
    %44 = arith.addf %37, %43 : vector<4x1xf32>
    %c0_20 = arith.constant 0 : index
    %c0_21 = arith.constant 0 : index
    %c0_22 = arith.constant 0 : index
    %45 = vector.load %arg5[%c0_20, %c0_21, %c0_22] : memref<1x4x1xf32, #tpu.memory_space<vmem>>, vector<1x4x1xf32>
    %46 = vector.shape_cast %45 : vector<1x4x1xf32> to vector<4x1xf32>
    %47 = vector.shape_cast %44 : vector<4x1xf32> to vector<1x4x1xf32>
    tpu.vector_store %arg5[%c0_20, %c0_21, %c0_22], %47 {strides = array<i32>} : memref<1x4x1xf32, #tpu.memory_space<vmem>>, vector<1x4x1xf32>,
    return
  }
  func.func @transform_0(%arg0: i32, %arg1: i32) -> (i32, i32, i32) {
    %c0_i32 = arith.constant 0 : i32
    %c0_i32_0 = arith.constant 0 : i32
    return %arg0, %c0_i32, %arg1 : i32, i32, i32
  }
  func.func @transform_1(%arg0: i32, %arg1: i32) -> (i32, i32, i32) {
    %c0_i32 = arith.constant 0 : i32
    %c0_i32_0 = arith.constant 0 : i32
    return %arg0, %c0_i32, %arg1 : i32, i32, i32
  }
  func.func @transform_2(%arg0: i32, %arg1: i32) -> (i32, i32, i32) {
    %c0_i32 = arith.constant 0 : i32
    %c0_i32_0 = arith.constant 0 : i32
    %c0_i32_1 = arith.constant 0 : i32
    return %arg0, %c0_i32, %c0_i32_0 : i32, i32, i32
  }
  func.func @transform_3(%arg0: i32, %arg1: i32) -> (i32, i32, i32) {
    %c0_i32 = arith.constant 0 : i32
    %c0_i32_0 = arith.constant 0 : i32
    %c0_i32_1 = arith.constant 0 : i32
    return %arg0, %c0_i32, %c0_i32_0 : i32, i32, i32
  }
}

</mosaic_0001>

<bundles_post_ra>
// kernel: class_balanced_ce_loss.1
= control target key start
LH: loop header
LB: loop body
LE: loop exit
PB: predicated region body
PF: predicated region fallthrough
CT: control target
= control target key end

     0   :  { %s559_s12 = smov 0   ;;  %s561_s13 = smov 0   ;;  %s642_s0 = inlined_call_operand.vmem [shape: f32[2,4,256], index: 0, kind: input, shape index: {}]   ;;  %s643_s1 = inlined_call_operand.vmem [shape: s32[2,1,256], index: 1, kind: input, shape index: {}]   ;;  %s644_s2 = inlined_call_operand.vmem [shape: f32[2,4,1], index: 2, kind: output, shape index: {0}]   ;;  %s645_s3 = inlined_call_operand.vmem [shape: f32[2,4,1], index: 3, kind: output, shape index: {1}]  }
   0x1   :  { %s563_s14 = smov 0  }
   0x2 LB: > { %s26_s15 = sadd.s32 1, %s532_s13  ;;  %p472_p0 = scmp.ge.s32.totalorder %s536_s14, 1  ;;  %s536_s14 = sphi %s563_s14, %s14_s14   ;;  %s532_s13 = sphi %s561_s13, %s651_s13   ;;  %s528_s12 = sphi %s559_s12, %s650_s12  }
   0x3   : > { %p28_p1 = scmp.ge.s32.totalorder %s26_s15, 2  ;;  %p175_p2 = scmp.lt.s32.totalorder %s536_s14, 3 }
   0x5   : > { %s653_s15 = smov (%p28_p1, %s26_s15), 0  ;;  %p176_p3 = pnand %p472_p0, %p175_p2 }
   0x6   : > { %p215_p4 = scmp.lt.s32.totalorder (!%p176_p3), %s528_s12, 1 }
   0x7   : > { %179 = sbr.rel (%p176_p3) target bundleno = 208 (0xd0), region = 28 }
   0xc   : > { %v259_v0 = vlaneseq  ;;  %s655_s12 = smov (!%p215_p4, %s528_s12), 1  ;;  %vm277_vm2 = vcmask 1043456   ;;  %v538_v8 = vmov 0.0   ;;  %vm245_vm3 = vcmask 3072  }
   0xd   : > { %s475_s16 = sshll.u32 %s655_s12, 1  ;;  %s482_s17 = sshll.u32 %s655_s12, 3 }
   0xe   : > { %s231_s20 = scalar_lea.vmem %s643_s1, %s475_s16  ;;  %v260_v1 = vshrl.u32 %v259_v0, 7  ;;  %s222_s23 = scalar_lea.vmem %s642_s0, %s482_s17 }
   0xf   : > { %v249_v2 = vld [vmem:[%s231_s20] sm:$0x3]  ;;  %s476_s24 = sshll.u32 %s655_s12, 2 }
  0x10   : > { %v248_v3 = vld [vmem:[%s222_s23] sm:$0xff]  ;;  %v261_v4 = vperm.slane %v249_v2, 0  ;;  %v262_v5 = vperm.slane %v249_v2, 1  ;;  %s608_s27 = scalar_lea.vmem %s644_s2, %s476_s24  ;;  %s615_s30 = scalar_lea.vmem %s645_s3, %s476_s24 }
  0x11   : > { %272 = vst [vmem:[#allocation1] ss:$2 sm:$0xff] %v248_v3 }
  0x12   : > { %vm587_vm0 = vcmp.eq.s32.totalorder %v260_v1, %v261_v4  ;;  %vm591_vm1 = vcmp.eq.s32.totalorder %v260_v1, %v262_v5  ;;  %246 = vst.msk [vmem:[%s608_s27] sm:$0xf] %vm245_vm3, %v538_v8 }
  0x13   : > { %v478_v9 = vsel %vm587_vm0, 1.0, %v538_v8  ;;  %v479_v10 = vsel %vm591_vm1, 1.0, %v538_v8  ;;  %247 = vst.msk [vmem:[%s615_s30] sm:$0xf] %vm245_vm3, %v538_v8 }
  0x14   : > { %v329_v11 = vsel %vm277_vm2, %v478_v9, 0.0  ;;  %v330_v12 = vsel %vm277_vm2, %v479_v10, 0.0 }
  0x15   : > { %v331_v13 = vadd.f32 %v330_v12, %v329_v11 }
  0x17   : > { %332 = vadd.xlane.f32.xlu0 %v331_v13 }
  0x18   : > { %v273_v14 = vld.sshfl [vmem:[#allocation1] sm:$0xff pattern:$0x75316420]  ;;  %v274_v15 = vld.sshfl [vmem:[#allocation1 + $0x8] sm:$0xff pattern:$0x75316420] }
  0x19   : > { %v278_v16 = vsel %vm277_vm2, %v273_v14, -inf  ;;  %v285_v17 = vsel %vm277_vm2, %v274_v15, -inf  ;;  %v324_v0 = vld [vmem:[%s608_s27] sm:$0xf] }
  0x1a   : > { %v279_v18 = vrot.slane %v278_v16, 4  ;;  %v286_v19 = vrot.slane %v285_v17, 4 }
  0x1c   : > { %v280_v20 = vmax.f32 %v278_v16, %v279_v18  ;;  %v287_v21 = vmax.f32 %v285_v17, %v286_v19 }
  0x1e   : > { %v281_v22 = vrot.slane %v280_v20, 2  ;;  %v288_v23 = vrot.slane %v287_v21, 2 }
  0x20   : > { %v282_v24 = vmax.f32 %v280_v20, %v281_v22  ;;  %v289_v25 = vmax.f32 %v287_v21, %v288_v23 }
  0x22   : > { %v283_v26 = vrot.slane %v282_v24, 1  ;;  %v290_v27 = vrot.slane %v289_v25, 1 }
  0x24   : > { %v284_v28 = vmax.f32 %v282_v24, %v283_v26  ;;  %v291_v29 = vmax.f32 %v289_v25, %v290_v27 }
  0x26   : > { %v294_v30 = vrot.slane %v291_v29, 4 }
  0x28   : > { %v295_v31 = vsel %vm277_vm2, %v284_v28, %v294_v30 }
  0x29   : > { %v297_v32 = vsub.f32 %v248_v3, %v295_v31  ;;  %v337_v3 = vld [vmem:[%s615_s30] sm:$0xf] }
  0x2b   : > { %v298_v33 = vmul.f32 1.442695, %v297_v32 }
  0x2d   : > { %508 = vpow2.f32 %v298_v33 }
  0x33   : > { %v509_v34 = vpop.eup %508 }
  0x34   : > { %301 = vst [vmem:[#allocation1] ss:$2 sm:$0xff] %v509_v34 }
  0x3b   : > { %v302_v35 = vld.sshfl [vmem:[#allocation1] sm:$0xff pattern:$0x75316420]  ;;  %v303_v36 = vld.sshfl [vmem:[#allocation1 + $0x8] sm:$0xff pattern:$0x75316420] }
  0x3c   : > { %v306_v37 = vsel %vm277_vm2, %v302_v35, 0.0  ;;  %v313_v38 = vsel %vm277_vm2, %v303_v36, 0.0  ;;  %339 = vst [vmem:[#allocation1] ss:$2 sm:$0xff] %v297_v32 }
  0x3d   : > { %v307_v39 = vrot.slane %v306_v37, 4  ;;  %v314_v40 = vrot.slane %v313_v38, 4 }
  0x3f   : > { %v308_v41 = vadd.f32 %v307_v39, %v306_v37  ;;  %v315_v42 = vadd.f32 %v314_v40, %v313_v38 }
  0x41   : > { %v309_v43 = vrot.slane %v308_v41, 2  ;;  %v316_v44 = vrot.slane %v315_v42, 2 }
  0x43   : > { %v310_v45 = vadd.f32 %v309_v43, %v308_v41  ;;  %v317_v46 = vadd.f32 %v316_v44, %v315_v42  ;;  %v340_v52 = vld.sshfl [vmem:[#allocation1] sm:$0xff pattern:$0x75316420]  ;;  %v341_v55 = vld.sshfl [vmem:[#allocation1 + $0x8] sm:$0xff pattern:$0x75316420] }
  0x45   : > { %v311_v47 = vrot.slane %v310_v45, 1  ;;  %v318_v48 = vrot.slane %v317_v46, 1 }
  0x47   : > { %v312_v49 = vadd.f32 %v311_v47, %v310_v45  ;;  %v319_v50 = vadd.f32 %v318_v48, %v317_v46 }
  0x49   : > { %510 = vlog2.f32 %v312_v49 }
  0x4a   : > { %512 = vlog2.f32 %v319_v50 }
  0x4f   : > { %v511_v51 = vpop.eup %510 }
  0x50   : > { %v513_v53 = vpop.eup %512  ;;  %v321_v54 = vmul.f32 0.6931472, %v511_v51 }
  0x51   : > { %v323_v56 = vmul.f32 0.6931472, %v513_v53 }
  0x52   : > { %v344_v57 = vsub.f32 %v321_v54, %v340_v52 }
  0x53   : > { %v345_v58 = vsub.f32 %v323_v56, %v341_v55 }
  0x54   : > { %v346_v59 = vsel %vm587_vm0, %v344_v57, 0.0 }
  0x55   : > { %v347_v60 = vsel %vm591_vm1, %v345_v58, 0.0  ;;  %v348_v61 = vsel %vm277_vm2, %v346_v59, 0.0 }
  0x56   : > { %v349_v62 = vsel %vm277_vm2, %v347_v60, 0.0 }
  0x57   : > { %v350_v63 = vadd.f32 %v349_v62, %v348_v61 }
  0x59   : > { %351 = vadd.xlane.f32.xlu0 %v350_v63 }
  0x8a   : > { %v333_v1 = vpop.xlane.xlu0 %332 }
  0x8b   : > { %v334_v2 = vadd.f32 %v333_v1, %v324_v0 }
  0x8d   : > { %336 = vst.msk [vmem:[%s608_s27] sm:$0xf] %vm245_vm3, %v334_v2 }
  0xcc   : > { %v352_v4 = vpop.xlane.xlu0 %351 }
  0xcd   : > { %v353_v5 = vadd.f32 %v352_v4, %v337_v3 }
  0xcf   : > { %354 = vst.msk [vmem:[%s615_s30] sm:$0xf] %vm245_vm3, %v353_v5 }
  0xd0 PF: > { %s14_s14 = sadd.s32 1, %s536_s14   ;;  %s650_s12 = smov %s532_s13 }
  0xd1   : > { %p11_p5 = scmp.ge.s32.totalorder %s14_s14, 4   ;;  %s651_s13 = smov %s653_s15 }
  0xd3   :  { %13 = sbr.rel (!%p11_p5) target bundleno = 2 (0x2), region = 77 }

</bundles_post_ra>
